<compile_context>
chip_gen: v7x
topology: tpu7x:2x2x1
jax: 0.10.0
libtpu: 0.0.40
codegen_flags: <defaults>
</compile_context>

<pallas_src>
import functools

import jax
import jax.numpy as jnp
from jax import lax
from jax.experimental import pallas as pl
from jax.experimental.pallas import tpu as pltpu

SOBEL_X = ((-1.0, 0.0, 1.0), (-2.0, 0.0, 2.0), (-1.0, 0.0, 1.0))
SOBEL_Y = ((-1.0, -2.0, -1.0), (0.0, 0.0, 0.0), (1.0, 2.0, 1.0))

TILE_P = 128           # points per grid tile (sublane axis)
CDF_SUB = 256          # lanes per compare sub-slab inside the kernel
CDF_BLOCK_MAX = 4096   # lanes of cdf streamed per reduction grid step


def _round_up(x, m):
    return (x + m - 1) // m * m


# ----------------------------------------------------------------------------
# Kernel 1: fused gray conversion + Sobel edge magnitude + per-column max
# normalization + clip.  One grid step per image (whole image tile in VMEM).
# ----------------------------------------------------------------------------
def _sobel_kernel(scale_ref, img_ref, out_ref, pad_ref):
    H, W = out_ref.shape[1], out_ref.shape[2]
    scale = scale_ref[0]
    r = img_ref[0, 0]
    g = img_ref[0, 1]
    b = img_ref[0, 2]
    gray = (0.2989 * r + 0.587 * g + 0.114 * b) * scale          # (H, W) f32

    # 1-pixel zero halo built in VMEM (no host-side jnp.pad / extra HBM copy).
    pad_ref[...] = jnp.zeros(pad_ref.shape, jnp.float32)
    pad_ref[1:H + 1, 1:W + 1] = gray

    ex = jnp.zeros((H, W), jnp.float32)
    ey = jnp.zeros((H, W), jnp.float32)
    # 3x3 cross-correlation (== F.conv2d, padding=1) as a static stencil.
    for di in range(3):
        for dj in range(3):
            patch = pad_ref[di:di + H, dj:dj + W]
            wx = SOBEL_X[di][dj]
            wy = SOBEL_Y[di][dj]
            if wx != 0.0:
                ex = ex + wx * patch
            if wy != 0.0:
                ey = ey + wy * patch
    edges = jnp.sqrt(ex * ex + ey * ey)
    # PyTorch: edges.max(dim=1)[0].max(dim=1) -> per-(image, column) max over H.
    colmax = jnp.max(edges, axis=0, keepdims=True)                # (1, W)
    edges = edges * pl.reciprocal(colmax + 1e-7, approx=True)
    out_ref[0] = jnp.clip(edges, 1e-5, 1.0)


def compute_sobel_edge(images_nchw):
    """images: (N, C>=3, H, W) -> (N, H, W) normalized edge map."""
    images = images_nchw.astype(jnp.float32)
    N, C, H, W = images.shape
    # Matches the reference `if images.max() > 1.0: images /= 255`; gray is
    # linear in the image so the scale is applied to gray inside the kernel.
    scale = jnp.where(jnp.max(images) > 1.0, 1.0 / 255.0, 1.0)
    scale = scale.reshape(1).astype(jnp.float32)
    # Whole-image tiles: fine up to ~720p frames; larger frames would need row
    # tiling with a halo to stay inside VMEM (especially v7x's 64 MiB).
    return pl.pallas_call(
        _sobel_kernel,
        out_shape=jax.ShapeDtypeStruct((N, H, W), jnp.float32),
        grid=(N,),
        in_specs=[
            pl.BlockSpec(memory_space=pltpu.MemorySpace.SMEM),       # scale (1,)
            pl.BlockSpec((1, C, H, W), lambda i: (i, 0, 0, 0)),      # image
        ],
        out_specs=pl.BlockSpec((1, H, W), lambda i: (i, 0, 0)),
        scratch_shapes=[pltpu.VMEM((H + 2, W + 2), jnp.float32)],
        compiler_params=pltpu.CompilerParams(
            dimension_semantics=("parallel",),
            vmem_limit_bytes=32 * 1024 * 1024),
    )(scale, images)


# ----------------------------------------------------------------------------
# Kernel 2: fused LMC forward step with chunked (streamed) searchsorted.
#   new   = prev + (a * net_grad + b * noise)
#   mask  = (new < nr0) | (new > nr1) | (loss <= threshold)
#   idx   = searchsorted(cdf, u, right=True) - 1 == count(cdf <= u) - 1
#   resample masked rows from idx, clamp to [0,1], point2d = round(new * HW)
# Grid: (P tiles [parallel], cdf chunks [arbitrary/reduction]).
# ----------------------------------------------------------------------------
def _lmc_forward_kernel(prev_ref, grad_ref, noise_ref, lossle_ref, u_ref,
                        cdf_ref, newprev_ref, point_ref, count_ref,
                        *, a, b, nr0, nr1, width, height):
    c = pl.program_id(1)

    @pl.when(c == 0)
    def _init():
        count_ref[...] = jnp.zeros(count_ref.shape, jnp.int32)

    # Chunked count(cdf <= u): the cdf block (1, CB) is lane-dense, u is a
    # (TILE_P, 1) tile; each 256-lane sub-slab compare is (TILE_P, 256)
    # (~32 vregs) reduced over lanes and accumulated into (TILE_P, 1) int32.
    u_col = u_ref[...]                                            # (TILE_P, 1)
    cb = cdf_ref.shape[1]
    partial = jnp.zeros(count_ref.shape, jnp.int32)
    for j in range(0, cb, CDF_SUB):                               # static unroll
        slab = cdf_ref[:, j:j + CDF_SUB]                          # (1, CDF_SUB)
        cmp = (slab <= u_col).astype(jnp.int32)                   # (TILE_P, CDF_SUB)
        partial = partial + jnp.sum(cmp, axis=1, keepdims=True)
    count_ref[...] += partial

    @pl.when(c == pl.num_programs(1) - 1)
    def _finalize():
        new = prev_ref[...] + (grad_ref[...] * a + noise_ref[...] * b)  # (TILE_P, 2)
        oob = (new < nr0) | (new > nr1)
        oob_any = oob[:, 0:1] | oob[:, 1:2]                       # (TILE_P, 1)
        mask = oob_any | (lossle_ref[...] > 0.5)                  # (TILE_P, 1)

        # searchsorted(cdf, u, right=True) - 1  ==  count(cdf <= u) - 1
        idx = count_ref[...] - 1                                  # (TILE_P, 1)
        row = (idx // width).astype(jnp.float32) / float(height - 1)
        col = (idx % width).astype(jnp.float32) / float(width - 1)

        lane = lax.broadcasted_iota(jnp.int32, new.shape, 1)      # (TILE_P, 2)
        resampled = jnp.where(lane == 0,
                              jnp.broadcast_to(row, new.shape),
                              jnp.broadcast_to(col, new.shape))
        updated = jnp.where(jnp.broadcast_to(mask, new.shape), resampled, new)
        updated = jnp.clip(updated, 0.0, 1.0)
        newprev_ref[...] = updated

        hw = jnp.where(lane == 0, float(height - 1), float(width - 1))
        point_ref[...] = jnp.round(updated * hw)                  # (TILE_P, 2)


def lmc_forward_step(prev_pad, grad_pad, noise_pad, lossle_pad, u_pad, cdf_pad,
                     *, a, b, nr0, nr1, height, width, cdf_block):
    P_pad = prev_pad.shape[0]
    L_pad = cdf_pad.shape[1]
    n_pt = P_pad // TILE_P
    n_cb = L_pad // cdf_block
    kernel = functools.partial(_lmc_forward_kernel, a=a, b=b, nr0=nr0, nr1=nr1,
                               width=width, height=height)
    pt_map = lambda i, c: (i, 0)
    return pl.pallas_call(
        kernel,
        out_shape=(jax.ShapeDtypeStruct((P_pad, 2), jnp.float32),
                   jax.ShapeDtypeStruct((P_pad, 2), jnp.float32)),
        grid=(n_pt, n_cb),
        in_specs=[
            pl.BlockSpec((TILE_P, 2), pt_map),                    # prev
            pl.BlockSpec((TILE_P, 2), pt_map),                    # net_grad
            pl.BlockSpec((TILE_P, 2), pt_map),                    # noise
            pl.BlockSpec((TILE_P, 1), pt_map),                    # loss<=thr (0/1)
            pl.BlockSpec((TILE_P, 1), pt_map),                    # u
            pl.BlockSpec((1, cdf_block), lambda i, c: (0, c)),    # cdf chunk
        ],
        out_specs=(pl.BlockSpec((TILE_P, 2), pt_map),
                   pl.BlockSpec((TILE_P, 2), pt_map)),
        scratch_shapes=[pltpu.VMEM((TILE_P, 1), jnp.int32)],
        compiler_params=pltpu.CompilerParams(
            dimension_semantics=("parallel", "arbitrary"),
            vmem_limit_bytes=32 * 1024 * 1024),
    )(prev_pad, grad_pad, noise_pad, lossle_pad, u_pad, cdf_pad)


# ----------------------------------------------------------------------------
# LMC module (JAX version of the PyTorch class).  Images accepted NCHW.
# ----------------------------------------------------------------------------
class LMC:
    def __init__(self, images_nchw, coords, normalize_range, *, a, b,
                 lossminpc, minpct, key):
        images = jnp.asarray(images_nchw, jnp.float32)            # (N, C, H, W)
        self.NUM_IMGS = images.shape[0]
        self.HEIGHT = images.shape[2]
        self.WIDTH = images.shape[3]
        self.a, self.b = a, b
        self.num_points = coords.shape[0]
        self.normalize_range = normalize_range

        edges = compute_sobel_edge(images).reshape(self.NUM_IMGS, -1)
        probs = edges / jnp.sum(edges, axis=-1, keepdims=True)
        cdf = jnp.cumsum(probs, axis=-1)
        self.cdf = jnp.pad(cdf, ((0, 0), (1, 0)))                 # (N, H*W + 1)

        # Kernel-2 streaming layout of the cdf: only image 0's row is used
        # (matches the PyTorch broadcast, which is only well-defined for a
        # single-image group); lane-padded with 2.0 (> any u) so the padding
        # never contributes to the count.
        L = self.cdf.shape[1]
        self._cdf_block = min(CDF_BLOCK_MAX, _round_up(L, CDF_SUB))
        L_pad = _round_up(L, self._cdf_block)
        self.cdf_padded = jnp.pad(self.cdf[0:1], ((0, 0), (0, L_pad - L)),
                                  constant_values=2.0)

        self.reinit = int(lossminpc * self.num_points)
        self.u_num = int(minpct * self.num_points)
        self._P_pad = _round_up(self.num_points, TILE_P)

        nr0, nr1 = normalize_range
        kx, ky = jax.random.split(key)
        x = jax.random.randint(kx, (self.num_points,), 0, self.WIDTH)
        y = jax.random.randint(ky, (self.num_points,), 0, self.HEIGHT)
        x = x.astype(jnp.float32) / (self.WIDTH - 1) * (nr1 - nr0) + nr0
        y = y.astype(jnp.float32) / (self.HEIGHT - 1) * (nr1 - nr0) + nr0
        self.prev_samples = jnp.clip(jnp.stack([y, x], axis=1), 0.0, 1.0)
        self.HW = jnp.array([self.HEIGHT - 1, self.WIDTH - 1], jnp.float32)

    def forward(self, net_grad, loss_per_pix, key):
        if net_grad is not None and loss_per_pix is not None:
            P, P_pad = self.num_points, self._P_pad
            kn, ku = jax.random.split(key)
            # TODO(synk): PyTorch draws exactly int(mask.sum()) uniforms
            # (data-dependent count) and scatters them; here num_points
            # uniforms are drawn and selected by the mask — same sampling
            # distribution with static shapes.  Torch RNG state / float64
            # searchsorted autocast are not reproduced (f32 on TPU).
            noise = jax.random.normal(kn, (P_pad, 2), jnp.float32)
            u = jax.random.uniform(ku, (P_pad, 1), jnp.float32)

            # (reinit+1)-th smallest loss == torch.topk(..., largest=False)[-1]
            thr = jnp.sort(loss_per_pix.reshape(-1))[self.reinit]
            loss_le = (loss_per_pix.reshape(P, 1) <= thr).astype(jnp.float32)

            pad = P_pad - P
            prev_pad = jnp.pad(self.prev_samples.astype(jnp.float32),
                               ((0, pad), (0, 0)))
            grad_pad = jnp.pad(net_grad.astype(jnp.float32), ((0, pad), (0, 0)))
            lossle_pad = jnp.pad(loss_le, ((0, pad), (0, 0)))

            nr0, nr1 = self.normalize_range
            new_prev, point2d = lmc_forward_step(
                prev_pad, grad_pad, noise, lossle_pad, u, self.cdf_padded,
                a=self.a, b=self.b, nr0=nr0, nr1=nr1,
                height=self.HEIGHT, width=self.WIDTH,
                cdf_block=self._cdf_block)
            self.prev_samples = new_prev[:P]
            return point2d[:P]
        return jnp.round(self.prev_samples * self.HW)


if __name__ == "__main__":
    key = jax.random.PRNGKey(0)
    k_img, k_init, k_grad, k_loss, k_fwd = jax.random.split(key, 5)

    N, C, H, W = 2, 3, 16, 16
    P = 64

    images = jax.random.uniform(k_img, (N, C, H, W), jnp.float32)   # NCHW
    coords = jnp.zeros((P, 2), jnp.float32)                         # shape only

    lmc = LMC(images, coords, normalize_range=(0.0, 1.0),
              a=0.01, b=0.001, lossminpc=0.1, minpct=0.05, key=k_init)

    net_grad = 0.1 * jax.random.normal(k_grad, (P, 2), jnp.float32)
    loss_per_pix = jax.random.uniform(k_loss, (P,), jnp.float32)

    point2d = lmc.forward(net_grad, loss_per_pix, key=k_fwd)
    jax.block_until_ready(point2d)
    jax.block_until_ready(lmc.prev_samples)
    print("KERNEL_OK")
</pallas_src>

<mosaic_0001>
module attributes {stable_mosaic.version = 11 : i64} {
  func.func @_sobel_kernel(%arg0: i32, %arg1: memref<1xf32, #tpu.memory_space<smem>>, %arg2: memref<1x3x16x16xf32, #tpu.memory_space<vmem>>, %arg3: memref<1x16x16xf32, #tpu.memory_space<vmem>>, %arg4: memref<18x18xf32, #tpu.memory_space<vmem>>) attributes {dimension_semantics = [#tpu.dimension_semantics<parallel>], iteration_bounds = array<i64: 2>, scalar_prefetch = 0 : i64, scratch_operands = 1 : i64, tpu.core_type = #tpu.core_type<tc>, window_params = [{transform_indices = @transform_0, window_bounds = array<i64: 1>}, {transform_indices = @transform_1, window_bounds = array<i64: 1, 3, 16, 16>}, {transform_indices = @transform_2, window_bounds = array<i64: 1, 16, 16>}]} {
    %c0 = arith.constant 0 : index
    %0 = memref.load %arg1[%c0] : memref<1xf32, #tpu.memory_space<smem>>
    %c0_0 = arith.constant 0 : index
    %c0_1 = arith.constant 0 : index
    %c0_2 = arith.constant 0 : index
    %c0_3 = arith.constant 0 : index
    %1 = vector.load %arg2[%c0_0, %c0_1, %c0_2, %c0_3] : memref<1x3x16x16xf32, #tpu.memory_space<vmem>>, vector<1x1x16x16xf32>
    %2 = vector.shape_cast %1 : vector<1x1x16x16xf32> to vector<16x16xf32>
    %c0_4 = arith.constant 0 : index
    %c1 = arith.constant 1 : index
    %c0_5 = arith.constant 0 : index
    %c0_6 = arith.constant 0 : index
    %3 = vector.load %arg2[%c0_4, %c1, %c0_5, %c0_6] : memref<1x3x16x16xf32, #tpu.memory_space<vmem>>, vector<1x1x16x16xf32>
    %4 = vector.shape_cast %3 : vector<1x1x16x16xf32> to vector<16x16xf32>
    %c0_7 = arith.constant 0 : index
    %c2 = arith.constant 2 : index
    %c0_8 = arith.constant 0 : index
    %c0_9 = arith.constant 0 : index
    %5 = vector.load %arg2[%c0_7, %c2, %c0_8, %c0_9] : memref<1x3x16x16xf32, #tpu.memory_space<vmem>>, vector<1x1x16x16xf32>
    %6 = vector.shape_cast %5 : vector<1x1x16x16xf32> to vector<16x16xf32>
    %cst = arith.constant 2.989000e-01 : f32
    %7 = vector.broadcast %cst : f32 to vector<16x16xf32>
    %8 = arith.mulf %7, %2 : vector<16x16xf32>
    %cst_10 = arith.constant 5.870000e-01 : f32
    %9 = vector.broadcast %cst_10 : f32 to vector<16x16xf32>
    %10 = arith.mulf %9, %4 : vector<16x16xf32>
    %11 = arith.addf %8, %10 : vector<16x16xf32>
    %cst_11 = arith.constant 1.140000e-01 : f32
    %12 = vector.broadcast %cst_11 : f32 to vector<16x16xf32>
    %13 = arith.mulf %12, %6 : vector<16x16xf32>
    %14 = arith.addf %11, %13 : vector<16x16xf32>
    %15 = vector.broadcast %0 : f32 to vector<16x16xf32>
    %16 = arith.mulf %14, %15 : vector<16x16xf32>
    %cst_12 = arith.constant 0.000000e+00 : f32
    %17 = vector.broadcast %cst_12 : f32 to vector<18x18xf32>
    %c0_13 = arith.constant 0 : index
    %c0_14 = arith.constant 0 : index
    %18 = vector.load %arg4[%c0_13, %c0_14] : memref<18x18xf32, #tpu.memory_space<vmem>>, vector<18x18xf32>
    tpu.vector_store %arg4[%c0_13, %c0_14], %17 {strides = array<i32>} : memref<18x18xf32, #tpu.memory_space<vmem>>, vector<18x18xf32>,
    %c1_15 = arith.constant 1 : index
    %c1_16 = arith.constant 1 : index
    %19 = vector.load %arg4[%c1_15, %c1_16] : memref<18x18xf32, #tpu.memory_space<vmem>>, vector<16x16xf32>
    tpu.vector_store %arg4[%c1_15, %c1_16], %16 {strides = array<i32>} : memref<18x18xf32, #tpu.memory_space<vmem>>, vector<16x16xf32>,
    %cst_17 = arith.constant 0.000000e+00 : f32
    %20 = vector.broadcast %cst_17 : f32 to vector<16x16xf32>
    %cst_18 = arith.constant 0.000000e+00 : f32
    %21 = vector.broadcast %cst_18 : f32 to vector<16x16xf32>
    %c0_19 = arith.constant 0 : index
    %c0_20 = arith.constant 0 : index
    %22 = vector.load %arg4[%c0_19, %c0_20] : memref<18x18xf32, #tpu.memory_space<vmem>>, vector<16x16xf32>
    %cst_21 = arith.constant -1.000000e+00 : f32
    %23 = vector.broadcast %cst_21 : f32 to vector<16x16xf32>
    %24 = arith.mulf %23, %22 : vector<16x16xf32>
    %25 = arith.addf %20, %24 : vector<16x16xf32>
    %cst_22 = arith.constant -1.000000e+00 : f32
    %26 = vector.broadcast %cst_22 : f32 to vector<16x16xf32>
    %27 = arith.mulf %26, %22 : vector<16x16xf32>
    %28 = arith.addf %21, %27 : vector<16x16xf32>
    %c0_23 = arith.constant 0 : index
    %c1_24 = arith.constant 1 : index
    %29 = vector.load %arg4[%c0_23, %c1_24] : memref<18x18xf32, #tpu.memory_space<vmem>>, vector<16x16xf32>
    %cst_25 = arith.constant -2.000000e+00 : f32
    %30 = vector.broadcast %cst_25 : f32 to vector<16x16xf32>
    %31 = arith.mulf %30, %29 : vector<16x16xf32>
    %32 = arith.addf %28, %31 : vector<16x16xf32>
    %c0_26 = arith.constant 0 : index
    %c2_27 = arith.constant 2 : index
    %33 = vector.load %arg4[%c0_26, %c2_27] : memref<18x18xf32, #tpu.memory_space<vmem>>, vector<16x16xf32>
    %cst_28 = arith.constant 1.000000e+00 : f32
    %34 = vector.broadcast %cst_28 : f32 to vector<16x16xf32>
    %35 = arith.mulf %34, %33 : vector<16x16xf32>
    %36 = arith.addf %25, %35 : vector<16x16xf32>
    %cst_29 = arith.constant -1.000000e+00 : f32
    %37 = vector.broadcast %cst_29 : f32 to vector<16x16xf32>
    %38 = arith.mulf %37, %33 : vector<16x16xf32>
    %39 = arith.addf %32, %38 : vector<16x16xf32>
    %c1_30 = arith.constant 1 : index
    %c0_31 = arith.constant 0 : index
    %40 = vector.load %arg4[%c1_30, %c0_31] : memref<18x18xf32, #tpu.memory_space<vmem>>, vector<16x16xf32>
    %cst_32 = arith.constant -2.000000e+00 : f32
    %41 = vector.broadcast %cst_32 : f32 to vector<16x16xf32>
    %42 = arith.mulf %41, %40 : vector<16x16xf32>
    %43 = arith.addf %36, %42 : vector<16x16xf32>
    %c1_33 = arith.constant 1 : index
    %c2_34 = arith.constant 2 : index
    %44 = vector.load %arg4[%c1_33, %c2_34] : memref<18x18xf32, #tpu.memory_space<vmem>>, vector<16x16xf32>
    %cst_35 = arith.constant 2.000000e+00 : f32
    %45 = vector.broadcast %cst_35 : f32 to vector<16x16xf32>
    %46 = arith.mulf %45, %44 : vector<16x16xf32>
    %47 = arith.addf %43, %46 : vector<16x16xf32>
    %c2_36 = arith.constant 2 : index
    %c0_37 = arith.constant 0 : index
    %48 = vector.load %arg4[%c2_36, %c0_37] : memref<18x18xf32, #tpu.memory_space<vmem>>, vector<16x16xf32>
    %cst_38 = arith.constant -1.000000e+00 : f32
    %49 = vector.broadcast %cst_38 : f32 to vector<16x16xf32>
    %50 = arith.mulf %49, %48 : vector<16x16xf32>
    %51 = arith.addf %47, %50 : vector<16x16xf32>
    %cst_39 = arith.constant 1.000000e+00 : f32
    %52 = vector.broadcast %cst_39 : f32 to vector<16x16xf32>
    %53 = arith.mulf %52, %48 : vector<16x16xf32>
    %54 = arith.addf %39, %53 : vector<16x16xf32>
    %c2_40 = arith.constant 2 : index
    %c1_41 = arith.constant 1 : index
    %55 = vector.load %arg4[%c2_40, %c1_41] : memref<18x18xf32, #tpu.memory_space<vmem>>, vector<16x16xf32>
    %cst_42 = arith.constant 2.000000e+00 : f32
    %56 = vector.broadcast %cst_42 : f32 to vector<16x16xf32>
    %57 = arith.mulf %56, %55 : vector<16x16xf32>
    %58 = arith.addf %54, %57 : vector<16x16xf32>
    %c2_43 = arith.constant 2 : index
    %c2_44 = arith.constant 2 : index
    %59 = vector.load %arg4[%c2_43, %c2_44] : memref<18x18xf32, #tpu.memory_space<vmem>>, vector<16x16xf32>
    %cst_45 = arith.constant 1.000000e+00 : f32
    %60 = vector.broadcast %cst_45 : f32 to vector<16x16xf32>
    %61 = arith.mulf %60, %59 : vector<16x16xf32>
    %62 = arith.addf %51, %61 : vector<16x16xf32>
    %cst_46 = arith.constant 1.000000e+00 : f32
    %63 = vector.broadcast %cst_46 : f32 to vector<16x16xf32>
    %64 = arith.mulf %63, %59 : vector<16x16xf32>
    %65 = arith.addf %58, %64 : vector<16x16xf32>
    %66 = arith.mulf %62, %62 : vector<16x16xf32>
    %67 = arith.mulf %65, %65 : vector<16x16xf32>
    %68 = arith.addf %66, %67 : vector<16x16xf32>
    %69 = math.sqrt %68 : vector<16x16xf32>
    %cst_47 = arith.constant dense<0xFF800000> : vector<16xf32>
    %70 = vector.multi_reduction <maximumf>, %69, %cst_47 [0] : vector<16x16xf32> to vector<16xf32>
    %71 = vector.shape_cast %70 : vector<16xf32> to vector<1x16xf32>
    %cst_48 = arith.constant 1.000000e-07 : f32
    %72 = vector.broadcast %cst_48 : f32 to vector<1x16xf32>
    %73 = arith.addf %71, %72 : vector<1x16xf32>
    %74 = tpu.reciprocal %73 {approx = true} : vector<1x16xf32> -> vector<1x16xf32>
    %75 = vector.broadcast %74 : vector<1x16xf32> to vector<16x16xf32>
    %76 = arith.mulf %69, %75 : vector<16x16xf32>
    %cst_49 = arith.constant 9.99999974E-6 : f32
    %cst_50 = arith.constant 1.000000e+00 : f32
    %77 = vector.broadcast %cst_49 : f32 to vector<16x16xf32>
    %78 = arith.maximumf %77, %76 : vector<16x16xf32>
    %79 = vector.broadcast %cst_50 : f32 to vector<16x16xf32>
    %80 = arith.minimumf %79, %78 : vector<16x16xf32>
    %c0_51 = arith.constant 0 : index
    %c0_52 = arith.constant 0 : index
    %c0_53 = arith.constant 0 : index
    %81 = vector.load %arg3[%c0_51, %c0_52, %c0_53] : memref<1x16x16xf32, #tpu.memory_space<vmem>>, vector<1x16x16xf32>
    %82 = vector.shape_cast %81 : vector<1x16x16xf32> to vector<16x16xf32>
    %83 = vector.shape_cast %80 : vector<16x16xf32> to vector<1x16x16xf32>
    tpu.vector_store %arg3[%c0_51, %c0_52, %c0_53], %83 {strides = array<i32>} : memref<1x16x16xf32, #tpu.memory_space<vmem>>, vector<1x16x16xf32>,
    return
  }
  func.func @transform_0(%arg0: i32) -> i32 {
    %c0_i32 = arith.constant 0 : i32
    %c0_i32_0 = arith.constant 0 : i32
    return %c0_i32 : i32
  }
  func.func @transform_1(%arg0: i32) -> (i32, i32, i32, i32) {
    %c0_i32 = arith.constant 0 : i32
    %c0_i32_0 = arith.constant 0 : i32
    %c0_i32_1 = arith.constant 0 : i32
    %c0_i32_2 = arith.constant 0 : i32
    return %arg0, %c0_i32, %c0_i32_0, %c0_i32_1 : i32, i32, i32, i32
  }
  func.func @transform_2(%arg0: i32) -> (i32, i32, i32) {
    %c0_i32 = arith.constant 0 : i32
    %c0_i32_0 = arith.constant 0 : i32
    %c0_i32_1 = arith.constant 0 : i32
    return %arg0, %c0_i32, %c0_i32_0 : i32, i32, i32
  }
}

</mosaic_0001>

<bundles_post_ra>
// kernel: tpu_custom_call.1
= control target key start
LH: loop header
LB: loop body
LE: loop exit
PB: predicated region body
PF: predicated region fallthrough
CT: control target
= control target key end

     0   :  { %s782_s0 = inlined_call_operand.<no memory space> [shape: f32[1], index: 0, kind: input, shape index: {}]   ;;  %s783_s1 = inlined_call_operand.hbm [shape: f32[2,3,16,16], index: 1, kind: input, shape index: {}]   ;;  %s784_s2 = inlined_call_operand.hbm [shape: f32[2,16,16], index: 2, kind: output, shape index: {}]  }
   0x1   :  { %7 = sst [smem:[#allocation3]] %s782_s0 }
   0x2   :  { %8 = vsyncpa [#allocation5], 0 }
   0x3   :  { %10 = vsyncpa [#allocation5 + $0x1], 0 }
   0x4   :  { %11 = vsyncpa [#allocation6], 0 }
   0x5   :  { %13 = vsyncpa [#allocation6 + $0x1], 0  ;;  %s621_s11 = smov 0   ;;  %s623_s12 = smov 0  }
   0x6   :  { %s625_s13 = smov 0   ;;  %s627_s14 = smov 0  }
   0x7 LB: > { %s642_s0 = sadd.s32 4294967295, %s591_s14   ;;  %s416_s15 = sadd.s32 4294967294, %s591_s14   ;;  %s591_s14 = sphi %s627_s14, %s796_s14   ;;  %s587_s13 = sphi %s625_s13, %s795_s13   ;;  %s583_s12 = sphi %s623_s12, %s794_s12   ;;  %s579_s11 = sphi %s621_s11, %s793_s11  }
   0x8   : > { %s646_s16 = sadd.s32 1, %s591_s14   ;;  %s47_s17 = sadd.s32 1, %s587_s13 }
   0x9   : > { %s44_s18 = ssub.s32 %s591_s14, %s646_s16  ;;  %p54_p0 = scmp.ne.s32.totalorder %s587_s13, %s583_s12 }
   0xa   : > { %p45_p1 = scmp.eq.s32.totalorder %s44_s18, 0  ;;  %p55_p2 = scmp.eq.s32.totalorder %s591_s14, 0 }
   0xb   : > { %p60_p3 = scmp.ne.s32.totalorder %s583_s12, %s579_s11  ;;  %p61_p4 = scmp.eq.s32.totalorder %s642_s0, 0 }
   0xc   : > { %s658_s19 = scalar_select %p45_p1, %s587_s13, %s47_s17  }
   0xd   : > { %p56_p5 = por %p55_p2, %p54_p0  ;;  %p660_p6 = por %p61_p4, %p60_p3 }
   0xe   : > { %p84_p7 = scmp.eq.s32.totalorder %s642_s0, 1  ;;  %p90_p8 = scmp.eq.s32.totalorder %s416_s15, 1 }
   0xf   : > { %p447_p10 = scmp.lt.s32.totalorder %s591_s14, 2  ;;  %s113_s23 = sand.u32 1, %s587_s13  }
  0x10   : > { %p667_p11 = por %p84_p7, %p54_p0  ;;  %p671_p12 = por %p90_p8, %p60_p3 }
  0x11   : > { %s433_s24 = smul.u32 768, %s591_s14  ;;  %p682_p13 = pnand %p447_p10, %p56_p5 }
  0x12   : > { %s787_s21 = scalar_select %p667_p11, 1, 0 }
  0x13   : > { %s788_s22 = scalar_select %p671_p12, 1, 0 }
  0x14   : > { %s432_s25 = smul.u32 48, %s113_s23  ;;  %s680_s28 = scalar_lea.hbm %s783_s1, %s433_s24 }
  0x15   : > { %s688_s4 = scalar_lea.sflag [#allocation5], %s113_s23  ;;  %s495_s5 = scalar_lea.hbm %s680_s28, 768 }
  0x16   : > { %s117_s30 = scalar_lea.vmem [#allocation4], %s432_s25  ;;  %p496_p0 = scmp.ne.s32.totalorder %s680_s28, %s495_s5 }
  0x17   : > { %s124_s3 = sshll.u32 %s117_s30, 4  ;;  %p497_p1 = pneg %p682_p13  ;;  %s686_s3 = int_to_ptr.vmem [resolvable:$true] %s124_s3 }
  0x18   : > { %s500_s8 = scalar_lea.hbm %s783_s1, 1536  ;;  %p501_p4 = scmp.lt.u32.totalorder %s680_s28, %s783_s1 }
  0x19   : > { %p498_p2 = pnand %p497_p1, %p496_p0  ;;  %p502_p5 = scmp.lt.u32.totalorder %s500_s8, %s495_s5 }
  0x1a   : > { %p504_p8 = scmp.lt.u32.totalorder %s495_s5, %s680_s28 }
  0x1b   : > { %p499_p3 = pneg %p498_p2  ;;  %p503_p7 = por %p502_p5, %p501_p4 }
  0x1d   : > { %p505_p10 = por %p504_p8, %p503_p7 }
  0x1f   : > { %p506_p9 = pnand %p505_p10, %p499_p3 }
  0x21   : > { %509 = shalt.err (!%p506_p9)
}
  0x22   : > { %s510_s15 = scalar_lea.vmem %s686_s3, 768  ;;  %s593_s17 = smov [#allocation4]  }
  0x23   : > { %p511_p0 = scmp.ne.s32.totalorder %s686_s3, %s510_s15  ;;  %s515_s18 = sshll.u32 %s593_s17, 4  ;;  %s516_s18 = int_to_ptr.vmem [resolvable:$false] %s515_s18 }
  0x24   : > { %s517_s23 = scalar_lea.vmem %s516_s18, 1536  ;;  %p518_p11 = scmp.lt.s32.totalorder %s686_s3, %s516_s18 }
  0x25   : > { %p513_p2 = pnand %p511_p0, %p497_p1  ;;  %p519_p4 = scmp.lt.s32.totalorder %s517_s23, %s510_s15 }
  0x27   : > { %p514_p12 = pneg %p513_p2  ;;  %p520_p5 = por %p519_p4, %p518_p11 }
  0x29   : > { %p521_p7 = pnand %p520_p5, %p514_p12 }
  0x2b   : > { %524 = shalt.err (!%p521_p7)
}
  0x2c   : > { %s594_s24 = smov 128   ;;  %s595_s25 = smov 8  }
  0x2d   : > { %442 = dma.hbm_to_vmem [thread:$0]  (!%p682_p13), %s680_s28, 768, %s686_s3, %s688_s4, %s594_s24, %s594_s24, %s595_s25  }
  0x2e   : > { %p420_p9 = scmp.ge.s32.totalorder %s591_s14, 1  ;;  %p132_p1 = scmp.lt.s32.totalorder %s591_s14, 3 }
  0x30   : > { %p133_p3 = pnand %p420_p9, %p132_p1 }
  0x31   : > { %s719_s26 = sand.u32 (!%p133_p3), 1, %s583_s12  }
  0x32   : > { %136 = sbr.rel (%p133_p3) target bundleno = 405 (0x195), region = 28  ;;  %s139_s30 = scalar_lea.sflag (!%p133_p3), [#allocation5], %s719_s26 }
  0x33   : > { %s434_s27 = smul.u32 (!%p133_p3), 48, %s719_s26 }
  0x35   : > { %s142_s5 = scalar_lea.vmem (!%p133_p3), [#allocation4], %s434_s27 }
  0x39   : > { %570 = dma.done.wait (%p660_p6), %s139_s30, 768  }
  0x3a   : > { %572 = vsyncadd (%p660_p6), %s139_s30, 4294966528  ;;  %vm185_vm0 = vcmask 146432   ;;  %v596_v0 = vmov 0.0   ;;  %s163_s28 = sld [smem:[#allocation3]]  ;;  %vm188_vm1 = vcmask 140288   ;;  %v164_v1 = vld [vmem:[%s142_s5] sm:$0xff] }
  0x3b   : > { %186 = vst.msk [vmem:[#allocation2] sm:$0xff] %vm185_vm0, %v596_v0  ;;  %187 = vst.msk [vmem:[#allocation2 + $0x8] sm:$0xff] %vm185_vm0, %v596_v0  ;;  %v165_v2 = vld [vmem:[%s142_s5 + $0x8] sm:$0xff]  ;;  %v422_v3 = vld [vmem:[%s142_s5 + $0x10] sm:$0xff]  ;;  %v172_v7 = vmul.f32 0.2989, %v164_v1 }
  0x3c   : > { %189 = vst.msk [vmem:[#allocation2 + $0x10] sm:$0x3] %vm188_vm1, %v596_v0  ;;  %v423_v4 = vld [vmem:[%s142_s5 + $0x18] sm:$0xff]  ;;  %v424_v5 = vld [vmem:[%s142_s5 + $0x20] sm:$0xff]  ;;  %v425_v6 = vld [vmem:[%s142_s5 + $0x28] sm:$0xff]  ;;  %s597_s20 = smov 1  }
  0x3d   : > { %v173_v8 = vmul.f32 0.2989, %v165_v2  ;;  %v174_v9 = vmul.f32 0.587, %v422_v3  ;;  %v175_v10 = vmul.f32 0.587, %v423_v4 }
  0x3e   : > { %v178_v11 = vmul.f32 0.114, %v424_v5  ;;  %v179_v12 = vmul.f32 0.114, %v425_v6  ;;  %vm198_vm2 = vcmask 138248   ;;  %s598_s29 = smov 126  }
  0x3f   : > { %v176_v13 = vadd.f32 %v174_v9, %v172_v7  ;;  %v177_v14 = vadd.f32 %v175_v10, %v173_v8  ;;  %s599_s3 = smov 127   ;;  %vm309_vm6 = vcmask 130048   ;;  %s421_s4 = sshll.u32 %s719_s26, 4 }
  0x40   : > { %v182_v15 = vstv %s163_s28  ;;  %s431_s6 = sshll.u32 %s642_s0, 8  ;;  %s162_s7 = scalar_lea.vmem [#allocation7], %s421_s4 }
  0x41   : > { %v180_v16 = vadd.f32 %v178_v11, %v176_v13  ;;  %v181_v17 = vadd.f32 %v179_v12, %v177_v14  ;;  %s343_s8 = sshll.u32 %s162_s7, 4  ;;  %s734_s15 = scalar_lea.hbm %s784_s2, %s431_s6  ;;  %s736_s8 = int_to_ptr.vmem [resolvable:$true] %s343_s8 }
  0x42   : > { %s330_s0 = scalar_lea.sflag [#allocation6], %s719_s26  ;;  %s525_s17 = scalar_lea.vmem %s736_s8, 256 }
  0x43   : > { %v183_v18 = vmul.f32 %v182_v15, %v180_v16  ;;  %v184_v19 = vmul.f32 %v182_v15, %v181_v17  ;;  %p526_p6 = scmp.ne.s32.totalorder %s736_s8, %s525_s17  ;;  %p790_p11 = scmp.ne.s32.totalorder %s787_s21, 0 }
  0x44   : > { %s600_s18 = smov [#allocation7]  }
  0x45   : > { %192 = vrot.lane.b32.xlu0 %v183_v18, %s597_s20  ;;  %p527_p12 = pnand %p526_p6, %p790_p11  ;;  %s529_s23 = sshll.u32 %s600_s18, 4  ;;  %s530_s23 = int_to_ptr.vmem [resolvable:$false] %s529_s23 }
  0x46   : > { %s531_s24 = scalar_lea.vmem %s530_s23, 512  ;;  %p532_p8 = scmp.lt.s32.totalorder %s736_s8, %s530_s23 }
  0x47   : > { %p528_p13 = pneg %p527_p12  ;;  %p533_p10 = scmp.lt.s32.totalorder %s531_s24, %s525_s17 }
  0x49   : > { %194 = vrot.lane.b32.xlu0 %v184_v19, %s597_s20  ;;  %p534_p0 = por %p533_p10, %p532_p8 }
  0x4b   : > { %p535_p2 = pnand %p534_p0, %p528_p13 }
  0xb7   : > { %v193_v20 = vpop.permute.xlu0 %192 }
  0xb8   : > { %199 = vst.msk [vmem:[#allocation2 + $0x1] sm:$0xff] %vm198_vm2, %v193_v20 }
  0xbb   : > { %v195_v21 = vpop.permute.xlu0 %194 }
  0xbc   : > { %200 = vst.msk [vmem:[#allocation2 + $0x9] sm:$0xff] %vm198_vm2, %v195_v21 }
  0xbf   : > { %v201_v22 = vld [vmem:[#allocation2] sm:$0xff] }
  0xc0   : > { %221 = vrot.lane.b32.xlu0 %v201_v22, %s598_s29  ;;  %v203_v23 = vmul.f32 -1.0, %v201_v22  ;;  %v239_v25 = vld [vmem:[#allocation2 + $0x1] sm:$0xff]  ;;  %v207_v27 = vmul.f32 -2.0, %v201_v22 }
  0xc1   : > { %v245_v26 = vmul.f32 2.0, %v239_v25  ;;  %v241_v40 = vmul.f32 -2.0, %v239_v25 }
  0xc3   : > { %v202_v24 = vld [vmem:[#allocation2 + $0x8] sm:$0xff] }
  0xc4   : > { %231 = vrot.lane.b32.xlu0 %v203_v23, %s598_s29  ;;  %223 = vrot.lane.b32.xlu1 %v202_v24, %s598_s29  ;;  %v257_v28 = vld [vmem:[#allocation2 + $0x2] sm:$0xff]  ;;  %v208_v30 = vmul.f32 -2.0, %v202_v24  ;;  %v204_v31 = vmul.f32 -1.0, %v202_v24  ;;  %v258_v34 = vld [vmem:[#allocation2 + $0xa] sm:$0xff] }
  0xc5   : > { %v265_v29 = vmul.f32 2.0, %v257_v28  ;;  %v240_v32 = vld [vmem:[#allocation2 + $0x9] sm:$0xff]  ;;  %v266_v35 = vmul.f32 2.0, %v258_v34  ;;  %v259_v50 = vmul.f32 -1.0, %v257_v28  ;;  %v260_v5 = vmul.f32 -1.0, %v258_v34 }
  0xc6   : > { %v246_v33 = vmul.f32 2.0, %v240_v32  ;;  %v242_v61 = vmul.f32 -2.0, %v240_v32 }
  0xc8   : > { %249 = vrot.lane.b32.xlu0 %v245_v26, %s598_s29  ;;  %211 = vrot.lane.b32.xlu1 %v207_v27, %s599_s3 }
  0xcc   : > { %269 = vrot.lane.b32.xlu0 %v265_v29, %s599_s3  ;;  %213 = vrot.lane.b32.xlu1 %v208_v30, %s599_s3 }
  0xd0   : > { %279 = vrot.lane.b32.xlu0 %v257_v28, %s598_s29  ;;  %233 = vrot.lane.b32.xlu1 %v204_v31, %s598_s29 }
  0xd4   : > { %251 = vrot.lane.b32.xlu1 %v246_v33, %s598_s29 }
  0xd8   : > { %271 = vrot.lane.b32.xlu1 %v266_v35, %s599_s3 }
  0xdc   : > { %281 = vrot.lane.b32.xlu1 %v258_v34, %s598_s29 }
 0x132   : > { %v222_v36 = vpop.permute.xlu0 %221 }
 0x133   : > { %v227_v39 = vadd.f32 %v222_v36, %v203_v23 }
 0x135   : > { %v243_v44 = vadd.f32 %v241_v40, %v227_v39 }
 0x136   : > { %v224_v37 = vpop.permute.xlu1 %223  ;;  %v232_v38 = vpop.permute.xlu0 %231 }
 0x137   : > { %v228_v55 = vadd.f32 %v224_v37, %v204_v31 }
 0x139   : > { %v244_v0 = vadd.f32 %v242_v61, %v228_v55 }
 0x13a   : > { %v212_v41 = vpop.permute.xlu1 %211  ;;  %v250_v42 = vpop.permute.xlu0 %249 }
 0x13b   : > { %v217_v43 = vadd.f32 %v212_v41, %v203_v23  ;;  %v255_v46 = vadd.f32 %v250_v42, %v243_v44 }
 0x13d   : > { %v237_v45 = vadd.f32 %v232_v38, %v217_v43  ;;  %v261_v52 = vadd.f32 %v259_v50, %v255_v46 }
 0x13e   : > { %v214_v47 = vpop.permute.xlu1 %213  ;;  %v270_v48 = vpop.permute.xlu0 %269 }
 0x13f   : > { %v263_v49 = vadd.f32 %v257_v28, %v237_v45  ;;  %v218_v58 = vadd.f32 %v214_v47, %v204_v31 }
 0x141   : > { %v275_v51 = vadd.f32 %v270_v48, %v263_v49 }
 0x142   : > { %v234_v53 = vpop.permute.xlu1 %233  ;;  %v280_v54 = vpop.permute.xlu0 %279 }
 0x143   : > { %v285_v56 = vadd.f32 %v280_v54, %v261_v52  ;;  %v287_v57 = vadd.f32 %v280_v54, %v275_v51  ;;  %v238_v63 = vadd.f32 %v234_v53, %v218_v58 }
 0x145   : > { %v289_v59 = vmul.f32 %v285_v56, %v285_v56  ;;  %v291_v60 = vmul.f32 %v287_v57, %v287_v57  ;;  %v264_v4 = vadd.f32 %v258_v34, %v238_v63 }
 0x146   : > { %v252_v62 = vpop.permute.xlu1 %251 }
 0x147   : > { %v293_v1 = vadd.f32 %v291_v60, %v289_v59  ;;  %v256_v2 = vadd.f32 %v252_v62, %v244_v0 }
 0x149   : > { %489 = vrsqrt.f32 %v293_v1  ;;  %v262_v7 = vadd.f32 %v260_v5, %v256_v2  ;;  %vm297_vm3 = vcmp.eq.f32.partialorder %v293_v1, inf  ;;  %v300_v18 = vand.u32 2147483648, %v293_v1 }
 0x14a   : > { %v272_v3 = vpop.permute.xlu1 %271  ;;  %vm299_vm4 = vcmp.eq.f32.partialorder %v293_v1, 0.0 }
 0x14b   : > { %v276_v6 = vadd.f32 %v272_v3, %v264_v4 }
 0x14e   : > { %v282_v8 = vpop.permute.xlu1 %281 }
 0x14f   : > { %v286_v9 = vadd.f32 %v282_v8, %v262_v7  ;;  %v288_v10 = vadd.f32 %v282_v8, %v276_v6 }
 0x151   : > { %v290_v11 = vmul.f32 %v286_v9, %v286_v9  ;;  %v292_v12 = vmul.f32 %v288_v10, %v288_v10 }
 0x153   : > { %v294_v13 = vadd.f32 %v292_v12, %v290_v11  ;;  %v490_v14 = vpop.eup %489 }
 0x154   : > { %v296_v15 = vmul.f32 %v490_v14, %v293_v1 }
 0x155   : > { %491 = vrsqrt.f32 %v294_v13  ;;  %vm304_vm5 = vcmp.eq.f32.partialorder %v294_v13, inf  ;;  %v307_v21 = vand.u32 2147483648, %v294_v13  ;;  %vm306_vm7 = vcmp.eq.f32.partialorder %v294_v13, 0.0 }
 0x156   : > { %v298_v16 = vsel %vm297_vm3, %v293_v1, %v296_v15 }
 0x157   : > { %v301_v20 = vsel %vm299_vm4, %v300_v18, %v298_v16 }
 0x158   : > { %v310_v24 = vsel %vm309_vm6, %v301_v20, -inf }
 0x15f   : > { %v492_v17 = vpop.eup %491 }
 0x160   : > { %v303_v19 = vmul.f32 %v492_v17, %v294_v13 }
 0x162   : > { %v305_v22 = vsel %vm304_vm5, %v294_v13, %v303_v19 }
 0x163   : > { %v308_v23 = vsel %vm306_vm7, %v307_v21, %v305_v22 }
 0x164   : > { %v311_v25 = vsel %vm309_vm6, %v308_v23, -inf }
 0x165   : > { %v312_v26 = vmax.f32 %v310_v24, %v311_v25 }
 0x167   : > { %v313_v27 = vrot.slane %v312_v26, 4 }
 0x169   : > { %v314_v28 = vmax.f32 %v312_v26, %v313_v27 }
 0x16b   : > { %v315_v29 = vrot.slane %v314_v28, 2 }
 0x16d   : > { %v316_v30 = vmax.f32 %v314_v28, %v315_v29 }
 0x16f   : > { %v317_v31 = vrot.slane %v316_v30, 1 }
 0x171   : > { %v318_v32 = vmax.f32 %v316_v30, %v317_v31 }
 0x173   : > { %v319_v33 = vadd.f32 1e-07, %v318_v32 }
 0x175   : > { %493 = vrcp.f32 %v319_v33 }
 0x17f   : > { %v494_v34 = vpop.eup %493 }
 0x180   : > { %v321_v35 = vmul.f32 %v494_v34, %v301_v20  ;;  %v322_v36 = vmul.f32 %v494_v34, %v308_v23 }
 0x182   : > { %v323_v37 = vmax.f32 %v321_v35, 1e-05  ;;  %v324_v38 = vmax.f32 %v322_v36, 1e-05 }
 0x184   : > { %v325_v39 = vmin.f32 %v323_v37, 1.0  ;;  %v326_v40 = vmin.f32 %v324_v38, 1.0 }
 0x186   : > { %327 = vst.msk [vmem:[%s162_s7] sm:$0xff] %vm309_vm6, %v325_v39  ;;  %328 = vst.msk [vmem:[%s162_s7 + $0x8] sm:$0xff] %vm309_vm6, %v326_v40 }
 0x187   : > { %538 = shalt.err (!%p535_p2)
}
 0x188   : > { %s539_s25 = scalar_lea.hbm %s734_s15, 256  ;;  %s543_s5 = scalar_lea.hbm %s784_s2, 512 }
 0x189   : > { %p540_p4 = scmp.ne.s32.totalorder %s734_s15, %s539_s25  ;;  %p544_p9 = scmp.lt.u32.totalorder %s734_s15, %s784_s2 }
 0x18a   : > { %p545_p1 = scmp.lt.u32.totalorder %s543_s5, %s539_s25  ;;  %p547_p6 = scmp.lt.u32.totalorder %s539_s25, %s734_s15 }
 0x18b   : > { %p541_p5 = pnand %p540_p4, %p790_p11 }
 0x18c   : > { %p546_p3 = por %p545_p1, %p544_p9 }
 0x18d   : > { %p542_p7 = pneg %p541_p5 }
 0x18e   : > { %p548_p12 = por %p547_p6, %p546_p3 }
 0x190   : > { %p549_p13 = pnand %p548_p12, %p542_p7 }
 0x192   : > { %552 = shalt.err (!%p549_p13)
}
 0x193   : > { %s601_s29 = smov 128   ;;  %s602_s3 = smov 8  }
 0x194   : > { %437 = dma.vmem_to_hbm [thread:$0]  (%p790_p11), %s736_s8, 256, %s734_s15, %s330_s0, %s601_s29, %s601_s29, %s602_s3  }
 0x195 PF: > { %s358_s4 = sand.u32 1, %s579_s11   ;;  %p791_p8 = scmp.ne.s32.totalorder %s788_s22, 0 }
 0x196   : > { %p792_p10 = scmp.ge.s32.totalorder %s591_s14, 2  ;;  %s359_s6 = scalar_lea.sflag [#allocation6], %s358_s4 }
 0x198   : > { %p444_p0 = pnand %p792_p10, %p791_p8 }
 0x19a   : > { %574 = dma.done.wait (!%p444_p0), %s359_s6, 256  }
 0x19b   : > { %576 = vsyncadd (!%p444_p0), %s359_s6, 4294967040  ;;  %p16_p2 = scmp.ge.s32.totalorder %s646_s16, 4   ;;  %s793_s11 = smov %s583_s12 }
 0x19c   : > { %s794_s12 = smov %s587_s13  ;;  %s795_s13 = smov %s658_s19 }
 0x19d   : > { %s796_s14 = smov %s646_s16  ;;  %18 = sbr.rel (!%p16_p2) target bundleno = 7 (0x7), region = 75 }
 0x1a4   :  { %364 = vsyncpa [#allocation5], 1 }
 0x1a5   :  { %366 = vsyncpa [#allocation5 + $0x1], 1 }
 0x1a6   :  { %367 = vsyncpa [#allocation6], 1 }
 0x1a7   :  { %369 = vsyncpa [#allocation6 + $0x1], 1 }

</bundles_post_ra>
